<compile_context>
chip_gen: v5e
topology: v5e:2x2
jax: 0.10.0
libtpu: 0.0.40
codegen_flags: <defaults>
</compile_context>

<pallas_src>
import functools
import math

import jax
import jax.numpy as jnp
from jax.experimental import pallas as pl
from jax.experimental.pallas import tpu as pltpu

_LANE = 128
_MAX_COLS = 4096                # lane-dense slab width cap (multiple of 128)
_TILE_BYTES = 2 * 1024 * 1024   # per-tile cap; x4 (in+out double buffer) = 8 MiB


def _identity_kernel(x_ref, o_ref):
    # Hot path: full-tile VMEM load/store.
    o_ref[...] = x_ref[...]


def _sublane_multiple(dtype) -> int:
    # dtype-aware sublane packing: f32 -> 8, bf16/f16 -> 16, int8/fp8 -> 32.
    itemsize = jnp.dtype(dtype).itemsize
    return 8 * max(1, 4 // itemsize)


def _pick_cols(n_padded: int) -> int:
    # Largest multiple of 128 that divides n_padded, capped at _MAX_COLS.
    for k in range(_MAX_COLS // _LANE, 0, -1):
        c = k * _LANE
        if n_padded % c == 0:
            return c
    return _LANE  # unreachable: n_padded is a multiple of 128


def _identity_copy_2d(x2, tile_rows, tile_cols):
    rows, cols = x2.shape
    grid = (pl.cdiv(rows, tile_rows), cols // tile_cols)
    return pl.pallas_call(
        _identity_kernel,
        out_shape=jax.ShapeDtypeStruct((rows, cols), x2.dtype),
        grid_spec=pltpu.PrefetchScalarGridSpec(
            num_scalar_prefetch=0,
            grid=grid,
            in_specs=[pl.BlockSpec((tile_rows, tile_cols), lambda i, j: (i, j))],
            out_specs=pl.BlockSpec((tile_rows, tile_cols), lambda i, j: (i, j)),
        ),
        # Identity: output HBM buffer aliases the donated input buffer.
        input_output_aliases={0: 0},
        compiler_params=pltpu.CompilerParams(
            dimension_semantics=("parallel", "parallel"),
            vmem_limit_bytes=32 * 1024 * 1024,  # safe on v5e/v6e/v7x
        ),
    )(x2)


@functools.partial(jax.jit, donate_argnums=(0,))
def pm_hook_point_forward(x):
    """PMHookPoint.forward(x) == x, computed as a lane-dense tiled Pallas copy."""
    # TODO(synk): fwd/bwd hook registration is a PyTorch instrumentation feature
    # with no numerical effect; not representable in a Pallas kernel.
    orig_shape = x.shape
    n = math.prod(orig_shape)
    if n == 0:
        return x

    itemsize = jnp.dtype(x.dtype).itemsize
    sub = _sublane_multiple(x.dtype)

    # Flatten to 1D, then fold into a lane-dense [rows, cols] slab with cols a
    # large multiple of 128 so every vreg / store is full-width.
    flat = x.reshape(n)
    n_padded = ((n + _LANE - 1) // _LANE) * _LANE
    if n_padded != n:
        # Rare fallback (size not a multiple of 128): pad one partial lane row.
        flat = jnp.pad(flat, (0, n_padded - n))
    cols = _pick_cols(n_padded)
    rows = n_padded // cols
    x2 = flat.reshape(rows, cols)

    # Tile rows: dtype-aware sublane multiple, capped so one tile is ~2 MiB.
    max_tr = max(sub, (_TILE_BYTES // (cols * itemsize)) // sub * sub)
    tile_rows = rows if rows <= max_tr else max_tr

    # Tile cols: stay lane-dense; if the grid would collapse to one block,
    # split the columns so both v7x TensorCores get work.
    tile_cols = cols
    if pl.cdiv(rows, tile_rows) == 1 and cols % (2 * _LANE) == 0:
        tile_cols = cols // 2

    out2 = _identity_copy_2d(x2, tile_rows, tile_cols)

    out = out2.reshape(n_padded)
    if n_padded != n:
        out = out[:n]
    return out.reshape(orig_shape)


if __name__ == "__main__":
    key = jax.random.PRNGKey(0)
    shape, dtype = (2, 4, 16, 16), jnp.float32
    x = jax.random.normal(key, shape, dtype=dtype)
    # The input buffer is donated (aliased into the output), so regenerate the
    # reference values from the same deterministic key for the check.
    x_expected = jax.random.normal(key, shape, dtype=dtype)

    y = pm_hook_point_forward(x)  # x is donated; do not use `x` after this call
    y = jax.block_until_ready(y)

    assert y.shape == shape and y.dtype == dtype
    assert bool(jnp.all(y == x_expected))
    print("KERNEL_OK")
</pallas_src>

<mosaic_0001>
module attributes {stable_mosaic.version = 11 : i64} {
  func.func @_identity_kernel(%arg0: i32, %arg1: i32, %arg2: memref<1x1024xf32, #tpu.memory_space<vmem>>, %arg3: memref<1x1024xf32, #tpu.memory_space<vmem>>) attributes {dimension_semantics = [#tpu.dimension_semantics<parallel>, #tpu.dimension_semantics<parallel>], iteration_bounds = array<i64: 1, 2>, scalar_prefetch = 0 : i64, scratch_operands = 0 : i64, tpu.core_type = #tpu.core_type<tc>, window_params = [{transform_indices = @transform_0, window_bounds = array<i64: 1, 1024>}, {transform_indices = @transform_1, window_bounds = array<i64: 1, 1024>}]} {
    %c0 = arith.constant 0 : index
    %c0_0 = arith.constant 0 : index
    %0 = vector.load %arg2[%c0, %c0_0] : memref<1x1024xf32, #tpu.memory_space<vmem>>, vector<1x1024xf32>
    %c0_1 = arith.constant 0 : index
    %c0_2 = arith.constant 0 : index
    %1 = vector.load %arg3[%c0_1, %c0_2] : memref<1x1024xf32, #tpu.memory_space<vmem>>, vector<1x1024xf32>
    tpu.vector_store %arg3[%c0_1, %c0_2], %0 {strides = array<i32>} : memref<1x1024xf32, #tpu.memory_space<vmem>>, vector<1x1024xf32>,
    return
  }
  func.func @transform_0(%arg0: i32, %arg1: i32) -> (i32, i32) {
    %c0_i32 = arith.constant 0 : i32
    return %arg0, %arg1 : i32, i32
  }
  func.func @transform_1(%arg0: i32, %arg1: i32) -> (i32, i32) {
    %c0_i32 = arith.constant 0 : i32
    return %arg0, %arg1 : i32, i32
  }
}

</mosaic_0001>

<bundles_post_ra>
// kernel: pm_hook_point_forward.1
= control target key start
LH: loop header
LB: loop body
LE: loop exit
PB: predicated region body
PF: predicated region fallthrough
CT: control target
= control target key end

     0   :  { %s276_s6 = smov 0   ;;  %s280_s7 = smov 0   ;;  %s304_s0 = inlined_call_operand.vmem [shape: f32[1,2048], index: 0, kind: input, shape index: {}, may-alias: {0,1}]   ;;  %s305_s1 = inlined_call_operand.vmem [shape: f32[1,2048], index: 1, kind: output, shape index: {}, may-alias: {0,1}]  }
   0x1   :  { %s284_s8 = smov 0  }
   0x2 LB: > { %s20_s9 = sadd.s32 1, %s282_s7  ;;  %p235_p0 = scmp.ge.s32.totalorder %s286_s8, 1  ;;  %s286_s8 = sphi %s284_s8, %s11_s8   ;;  %s282_s7 = sphi %s280_s7, %s281_s7   ;;  %s278_s6 = sphi %s276_s6, %s277_s6  }
   0x3   : > { %p21_p1 = scmp.ge.s32.totalorder %s20_s9, 2  ;;  %p107_p2 = scmp.lt.s32.totalorder %s286_s8, 3 }
   0x5   : > { %s307_s9 = smov (%p21_p1, %s20_s9), 0  ;;  %p108_p3 = pnand %p235_p0, %p107_p2 }
   0x6   : > { %s236_s10 = sshll.u32 (!%p108_p3), %s278_s6, 3 }
   0x7   : > { %111 = sbr.rel (%p108_p3) target bundleno = 16 (0x10), region = 24  ;;  %p136_p4 = scmp.lt.s32.totalorder (!%p108_p3), %s236_s10, 15 }
   0xc   : > { %s309_s10 = smov (!%p136_p4, %s236_s10), 15 }
   0xd   : > { %s140_s13 = scalar_lea.vmem %s304_s0, %s309_s10  ;;  %s149_s16 = scalar_lea.vmem %s305_s1, %s309_s10 }
   0xe   : > { %v151_v0 = vld [vmem:[%s140_s13] sm:$0xff] }
   0xf   : > { %152 = vst [vmem:[%s149_s16] sm:$0xff] %v151_v0 }
  0x10 PF: > { %s11_s8 = sadd.s32 1, %s286_s8   ;;  %s277_s6 = smov %s282_s7  }
  0x11   : > { %p8_p5 = scmp.ge.s32.totalorder %s11_s8, 4   ;;  %s281_s7 = smov %s307_s9  }
  0x13   :  { %10 = sbr.rel (!%p8_p5) target bundleno = 2 (0x2), region = 54 }

</bundles_post_ra>
